<compile_context>
chip_gen: v6e
topology: v6e:2x2x1
jax: 0.10.0
libtpu: 0.0.40
codegen_flags: <defaults>
</compile_context>

<pallas_src>
import functools

import numpy as np

import jax
import jax.numpy as jnp
from jax import lax
from jax.experimental import pallas as pl
from jax.experimental.pallas import tpu as pltpu


def _hardswish(x):
    return x * jnp.clip(x + 3.0, 0.0, 6.0) * (1.0 / 6.0)


def _hardsigmoid(x):
    return jnp.clip(x + 3.0, 0.0, 6.0) * (1.0 / 6.0)


# ------------------------------ fused kernel ---------------------------------

def block_kernel(x_ref, wes_ref, be_ref, bo_ref, w2_ref, dwmask_ref,
                 poolT_ref, wse1t_ref, bse_ref, wse2T_ref, bsel_ref, w3t_ref,
                 o_ref, *, H, W, K, n_per, use_bf16):
    """One grid step = n_per batch samples, channel-major (C, n_per*H*W) slabs.

    x_ref     : (Cin, HWt)       pixels on lanes (sample-major), channels on sublanes
    wes_ref   : (Ce+Cout, Cin)   [conv1 ; skip] 1x1 weights, BN scales folded in
    be_ref    : (Ce, 2)          [b1 | b2]  folded-BN biases (expand / depthwise)
    bo_ref    : (Cout, 2)        [bsk | b3] folded-BN biases (skip / project)
    w2_ref    : (Ce, K*K)        depthwise taps (BN2 scale folded), col = dy*K+dx
    dwmask_ref: (K*K, HWt)       0/1 SAME-padding border masks per tap
    poolT_ref : (HWt, n_per)     per-sample mean-pool selector (1/HW entries)
    wse1t_ref : (Cse, Ce)        SE fc1 weight (transposed, SE-BN scale folded)
    bse_ref   : (Cse, 1)         SE-BN bias
    wse2T_ref : (Ce, Cse)        SE fc2 weight (transposed)
    bsel_ref  : (n_per, HWt)     per-sample 0/1 broadcast selector
    w3t_ref   : (Cout, Ce)       conv3 weight (transposed, BN3 scale folded)
    o_ref     : (Cout, HWt)      lane-dense output slab
    """
    Ce = w2_ref.shape[0]
    HWt = o_ref.shape[1]
    HW = H * W
    pd = K // 2
    mxu = jnp.bfloat16 if use_bf16 else jnp.float32

    # --- fused expand (conv1·bn1) and skip (1x1·bn): one MXU call --------------
    x = x_ref[...]                                                    # (Cin, HWt)
    h_es = jnp.dot(wes_ref[...].astype(mxu), x.astype(mxu),
                   preferred_element_type=jnp.float32)                # (Ce+Cout, HWt)
    h1 = _hardswish(h_es[:Ce, :] + be_ref[:, 0:1])                    # expand
    sk = h_es[Ce:, :] + bo_ref[:, 0:1]                                # skip branch

    # --- depthwise KxK, stride 1: K*K lane rotations + precomputed masks -------
    # (masks also zero any lanes that wrapped across sample / row boundaries)
    w2 = w2_ref[...]
    taps = [w2[:, t:t + 1] for t in range(K * K)]                     # (Ce, 1), hoisted
    masks = [dwmask_ref[t:t + 1, :] for t in range(K * K)]            # (1, HWt), hoisted
    acc = jnp.zeros((Ce, HWt), jnp.float32)
    for dy in range(K):
        for dx in range(K):
            t = dy * K + dx
            off = (dy - pd) * W + (dx - pd)
            if off == 0:                                              # center tap: no shift,
                acc = acc + h1 * taps[t]                              # mask is all-ones
            else:
                shifted = pltpu.roll(h1, shift=(-off) % HWt, axis=1)  # XLU rotate
                acc = acc + (shifted * masks[t]) * taps[t]
    h2 = _hardswish(acc + be_ref[:, 1:2])                             # bn2 bias + act2

    # --- Squeeze-and-Excite (per sample) ---------------------------------------
    if n_per == 1:
        pooled = jnp.sum(h2, axis=1, keepdims=True) * (1.0 / HW)      # XLU reduce (Ce,1)
    else:
        pooled = jnp.dot(h2, poolT_ref[...],
                         preferred_element_type=jnp.float32)          # (Ce, n_per)
    se = jnp.dot(wse1t_ref[...], pooled, preferred_element_type=jnp.float32)
    se = jnp.maximum(se + bse_ref[...], 0.0)                          # SE-BN bias + relu
    gate = _hardsigmoid(jnp.dot(wse2T_ref[...], se,
                                preferred_element_type=jnp.float32))  # (Ce, n_per)
    if n_per == 1:
        h2g = h2 * gate                                               # lane broadcast
    else:
        h2g = h2 * jnp.dot(gate, bsel_ref[...],
                           preferred_element_type=jnp.float32)        # per-sample expand

    # --- pointwise projection conv3 (bn3 folded) + skip + act3 -----------------
    out = jnp.dot(w3t_ref[...].astype(mxu), h2g.astype(mxu),
                  preferred_element_type=jnp.float32)
    o_ref[...] = _hardswish(out + bo_ref[:, 1:2] + sk)                # lane-dense store


# ------------------------ host-side constant tables ---------------------------

def _dw_masks(H, W, K, n_per):
    """(K*K, n_per*H*W) 0/1 masks: valid source pixel for each tap (SAME pad)."""
    pd = K // 2
    hh = np.arange(H)[:, None]
    ww = np.arange(W)[None, :]
    rows = []
    for dy in range(K):
        for dx in range(K):
            vy = (hh + dy - pd >= 0) & (hh + dy - pd < H)
            vx = (ww + dx - pd >= 0) & (ww + dx - pd < W)
            m = (vy & vx).astype(np.float32).reshape(1, H * W)
            rows.append(np.tile(m, (1, n_per)))
    return np.concatenate(rows, axis=0)


def _sample_selectors(HW, n_per):
    """bsel: (n_per, n_per*HW) 0/1 per-sample selector; poolT = bsel.T / HW."""
    bsel = np.kron(np.eye(n_per, dtype=np.float32), np.ones((1, HW), np.float32))
    poolT = np.ascontiguousarray(bsel.T) / float(HW)
    return poolT, bsel


# ------------------------------ wrapper --------------------------------------

def block_forward(x_nchw, pp, K=3, samples_per_step=None, use_bf16_mxu=False):
    """x_nchw: (N, Cin, H, W) float32. pp: prepared channel-major params."""
    N, Cin, H, W = x_nchw.shape
    Ce = pp["w2"].shape[0]
    Cse = pp["wse1t"].shape[0]
    Cout = pp["w3t"].shape[0]
    HW = H * W

    # How many samples to pack per grid step: fill >= ~2048 lanes per MXU call,
    # but keep >= 2 grid steps so both v7x TensorCores get work.
    if samples_per_step is None:
        target = max(1, 2048 // HW)
        samples_per_step = min(target, max(1, N // 2))
    n_per = max(1, int(samples_per_step))
    while N % n_per != 0:
        n_per -= 1
    n_steps = N // n_per
    HWt = n_per * HW

    x3 = (x_nchw.astype(jnp.float32)
          .reshape(n_steps, n_per, Cin, HW)
          .transpose(0, 2, 1, 3)
          .reshape(n_steps, Cin, HWt))          # channel-major, samples along lanes

    dwmask = jnp.asarray(_dw_masks(H, W, K, n_per))
    poolT_np, bsel_np = _sample_selectors(HW, n_per)
    poolT = jnp.asarray(poolT_np)
    bsel = jnp.asarray(bsel_np)

    kern = functools.partial(block_kernel, H=H, W=W, K=K, n_per=n_per,
                             use_bf16=use_bf16_mxu)

    def full(shape):
        return pl.BlockSpec(shape, lambda g, _s=len(shape): (0,) * _s)

    out3 = pl.pallas_call(
        kern,
        out_shape=jax.ShapeDtypeStruct((n_steps, Cout, HWt), jnp.float32),
        grid_spec=pltpu.PrefetchScalarGridSpec(
            num_scalar_prefetch=0,
            grid=(n_steps,),
            in_specs=[
                pl.BlockSpec((None, Cin, HWt), lambda g: (g, 0, 0)),   # x
                full((Ce + Cout, Cin)),                                # wes (scales folded)
                full((Ce, 2)),                                         # [b1 | b2]
                full((Cout, 2)),                                       # [bsk | b3]
                full((Ce, K * K)),                                     # depthwise taps
                full((K * K, HWt)),                                    # border masks
                full((HWt, n_per)),                                    # pool selector
                full((Cse, Ce)),                                       # SE fc1 (T)
                full((Cse, 1)),                                        # SE bias
                full((Ce, Cse)),                                       # SE fc2 (T)
                full((n_per, HWt)),                                    # broadcast selector
                full((Cout, Ce)),                                      # conv3 (T, scale folded)
            ],
            out_specs=pl.BlockSpec((None, Cout, HWt), lambda g: (g, 0, 0)),
        ),
        compiler_params=pltpu.CompilerParams(
            dimension_semantics=("parallel",)),   # shard batch steps across TCs (v7x)
    )(x3, pp["wes"], pp["be"], pp["bo"], pp["w2"], dwmask, poolT,
      pp["wse1t"], pp["bse"], pp["wse2T"], bsel, pp["w3t"])

    return (out3.reshape(n_steps, Cout, n_per, HW)
            .transpose(0, 2, 1, 3)
            .reshape(N, Cout, H, W))


# -------------------------- parameter construction ---------------------------

def make_params(key, Cin, Ce, Cout, K, reduction=4, eps=1e-5):
    Cse = max(Ce // reduction, 8)
    keys = iter(jax.random.split(key, 32))

    def conv_w(shape, fan_in):
        return jax.random.normal(next(keys), shape, jnp.float32) / jnp.sqrt(float(fan_in))

    def bn_fold(C):
        gamma = 1.0 + 0.1 * jax.random.normal(next(keys), (C,), jnp.float32)
        beta = 0.1 * jax.random.normal(next(keys), (C,), jnp.float32)
        mean = 0.1 * jax.random.normal(next(keys), (C,), jnp.float32)
        var = jax.random.uniform(next(keys), (C,), jnp.float32, minval=0.5, maxval=1.5)
        scale = gamma / jnp.sqrt(var + eps)
        bias = beta - mean * scale
        return scale.reshape(1, C), bias.reshape(1, C)

    p = {}
    p["w1"] = conv_w((Cin, Ce), Cin)                 # conv1 1x1
    p["s1"], p["b1"] = bn_fold(Ce)
    p["w2"] = conv_w((K * K, Ce), K * K)             # depthwise taps [dy*K+dx, c]
    p["s2"], p["b2"] = bn_fold(Ce)
    p["wse1"] = conv_w((Ce, Cse), Ce)                # SE fc1
    p["sse"], p["bse"] = bn_fold(Cse)
    p["wse2"] = conv_w((Cse, Ce), Cse)               # SE fc2
    p["w3"] = conv_w((Ce, Cout), Ce)                 # conv3 1x1
    p["s3"], p["b3"] = bn_fold(Cout)
    p["wsk"] = conv_w((Cin, Cout), Cin)              # skip 1x1 conv
    p["ssk"], p["bsk"] = bn_fold(Cout)
    return p


def prepare_params(p):
    """One-time repack: channel-major layouts, folded-BN scales baked into weights."""
    col = lambda a: a.reshape(-1, 1)
    s1, b1 = col(p["s1"]), col(p["b1"])
    s2, b2 = col(p["s2"]), col(p["b2"])
    s3, b3 = col(p["s3"]), col(p["b3"])
    ssk, bsk = col(p["ssk"]), col(p["bsk"])
    sse = p["sse"].reshape(1, -1)
    return {
        "wes": jnp.concatenate([p["w1"].T * s1, p["wsk"].T * ssk], axis=0),  # (Ce+Cout, Cin)
        "be": jnp.concatenate([b1, b2], axis=1),                             # (Ce, 2)
        "bo": jnp.concatenate([bsk, b3], axis=1),                            # (Cout, 2)
        "w2": p["w2"].T * s2,                                                # (Ce, K*K)
        "wse1t": (p["wse1"] * sse).T,                                        # (Cse, Ce)
        "bse": p["bse"].reshape(-1, 1),                                      # (Cse, 1)
        "wse2T": p["wse2"].T,                                                # (Ce, Cse)
        "w3t": p["w3"].T * s3,                                               # (Cout, Ce)
    }


# ------------------------------ reference ------------------------------------

def ref_forward(x_nchw, p, K=3):
    x = jnp.transpose(x_nchw, (0, 2, 3, 1)).astype(jnp.float32)
    Ce = p["w1"].shape[1]
    r = lambda a: a.reshape(1, 1, 1, -1)

    h = jnp.einsum("nhwc,ce->nhwe", x, p["w1"]) * r(p["s1"]) + r(p["b1"])
    h = _hardswish(h)

    wdw = p["w2"].reshape(K, K, 1, Ce)
    h2 = lax.conv_general_dilated(h, wdw, window_strides=(1, 1), padding="SAME",
                                  dimension_numbers=("NHWC", "HWIO", "NHWC"),
                                  feature_group_count=Ce)
    h2 = _hardswish(h2 * r(p["s2"]) + r(p["b2"]))

    pooled = jnp.mean(h2, axis=(1, 2))
    se = jnp.maximum(pooled @ p["wse1"] * p["sse"] + p["bse"], 0.0)
    gate = _hardsigmoid(se @ p["wse2"])
    h2 = h2 * gate[:, None, None, :]

    out = jnp.einsum("nhwe,eo->nhwo", h2, p["w3"]) * r(p["s3"]) + r(p["b3"])
    sk = jnp.einsum("nhwc,co->nhwo", x, p["wsk"]) * r(p["ssk"]) + r(p["bsk"])
    y = _hardswish(out + sk)
    return jnp.transpose(y, (0, 3, 1, 2))


# --------------------------------- main ---------------------------------------

if __name__ == "__main__":
    key = jax.random.PRNGKey(0)
    kx, kp, kx2 = jax.random.split(key, 3)

    N, Cin, H, W = 2, 4, 16, 16
    K, Ce, Cout = 3, 16, 8          # kernel_size=3, expand_size=16, out_size=8

    x = jax.random.normal(kx, (N, Cin, H, W), jnp.float32)
    params = make_params(kp, Cin, Ce, Cout, K)
    pp = prepare_params(params)

    # 1) f32 path, one sample per grid step (grid=(2,) -> both v7x TCs busy)
    y = jax.block_until_ready(block_forward(x, pp, K=K))
    y_ref = ref_forward(x, params, K=K)
    err = float(jnp.max(jnp.abs(y - y_ref)))
    assert y.shape == (N, Cout, H, W), y.shape
    assert err < 1e-3, f"f32 mismatch vs reference: {err}"

    # 2) packed path: 2 samples concatenated along lanes per grid step
    x4 = jax.random.normal(kx2, (4, Cin, H, W), jnp.float32)
    y4 = jax.block_until_ready(block_forward(x4, pp, K=K, samples_per_step=2))
    err4 = float(jnp.max(jnp.abs(y4 - ref_forward(x4, params, K=K))))
    assert err4 < 1e-3, f"packed mismatch vs reference: {err4}"

    # 3) bf16 MXU operands (v6e/v7x recommendation); f32 elementwise, looser tol
    yb = jax.block_until_ready(block_forward(x, pp, K=K, use_bf16_mxu=True))
    errb = float(jnp.max(jnp.abs(yb - y_ref)))
    assert errb < 1e-1, f"bf16 mismatch vs reference: {errb}"

    print("KERNEL_OK")
</pallas_src>

<mosaic_0001>
module attributes {stable_mosaic.version = 11 : i64} {
  func.func @block_kernel(%arg0: i32, %arg1: memref<1x4x256xf32, #tpu.memory_space<vmem>>, %arg2: memref<24x4xf32, #tpu.memory_space<vmem>>, %arg3: memref<16x2xf32, #tpu.memory_space<vmem>>, %arg4: memref<8x2xf32, #tpu.memory_space<vmem>>, %arg5: memref<16x9xf32, #tpu.memory_space<vmem>>, %arg6: memref<9x256xf32, #tpu.memory_space<vmem>>, %arg7: memref<256x1xf32, #tpu.memory_space<vmem>>, %arg8: memref<8x16xf32, #tpu.memory_space<vmem>>, %arg9: memref<8x1xf32, #tpu.memory_space<vmem>>, %arg10: memref<16x8xf32, #tpu.memory_space<vmem>>, %arg11: memref<1x256xf32, #tpu.memory_space<vmem>>, %arg12: memref<8x16xf32, #tpu.memory_space<vmem>>, %arg13: memref<1x8x256xf32, #tpu.memory_space<vmem>>) attributes {dimension_semantics = [#tpu.dimension_semantics<parallel>], iteration_bounds = array<i64: 2>, scalar_prefetch = 0 : i64, scratch_operands = 0 : i64, tpu.core_type = #tpu.core_type<tc>, window_params = [{transform_indices = @transform_0, window_bounds = array<i64: 1, 4, 256>}, {pipeline_mode = #tpu.pipeline_mode<synchronous>, transform_indices = @transform_1, window_bounds = array<i64: 24, 4>}, {pipeline_mode = #tpu.pipeline_mode<synchronous>, transform_indices = @transform_2, window_bounds = array<i64: 16, 2>}, {pipeline_mode = #tpu.pipeline_mode<synchronous>, transform_indices = @transform_3, window_bounds = array<i64: 8, 2>}, {pipeline_mode = #tpu.pipeline_mode<synchronous>, transform_indices = @transform_4, window_bounds = array<i64: 16, 9>}, {pipeline_mode = #tpu.pipeline_mode<synchronous>, transform_indices = @transform_5, window_bounds = array<i64: 9, 256>}, {pipeline_mode = #tpu.pipeline_mode<synchronous>, transform_indices = @transform_6, window_bounds = array<i64: 256, 1>}, {pipeline_mode = #tpu.pipeline_mode<synchronous>, transform_indices = @transform_7, window_bounds = array<i64: 8, 16>}, {pipeline_mode = #tpu.pipeline_mode<synchronous>, transform_indices = @transform_8, window_bounds = array<i64: 8, 1>}, {pipeline_mode = #tpu.pipeline_mode<synchronous>, transform_indices = @transform_9, window_bounds = array<i64: 16, 8>}, {pipeline_mode = #tpu.pipeline_mode<synchronous>, transform_indices = @transform_10, window_bounds = array<i64: 1, 256>}, {pipeline_mode = #tpu.pipeline_mode<synchronous>, transform_indices = @transform_11, window_bounds = array<i64: 8, 16>}, {transform_indices = @transform_12, window_bounds = array<i64: 1, 8, 256>}]} {
    %c0 = arith.constant 0 : index
    %c0_0 = arith.constant 0 : index
    %c0_1 = arith.constant 0 : index
    %0 = vector.load %arg1[%c0, %c0_0, %c0_1] : memref<1x4x256xf32, #tpu.memory_space<vmem>>, vector<1x4x256xf32>
    %1 = vector.shape_cast %0 : vector<1x4x256xf32> to vector<4x256xf32>
    %c0_2 = arith.constant 0 : index
    %c0_3 = arith.constant 0 : index
    %2 = vector.load %arg2[%c0_2, %c0_3] : memref<24x4xf32, #tpu.memory_space<vmem>>, vector<24x4xf32>
    %cst = arith.constant dense<0.000000e+00> : vector<24x256xf32>
    %3 = tpu.matmul %2, %1, %cst {dimension_numbers = #tpu.dot_dimension_numbers<[1], [0], [0], [1], [0, 0, 1, 1], [], []>} : vector<24x4xf32>, vector<4x256xf32>, vector<24x256xf32> -> vector<24x256xf32>
    %4 = vector.extract_strided_slice %3 {offsets = [0, 0], sizes = [16, 256], strides = [1, 1]} : vector<24x256xf32> to vector<16x256xf32>
    %c0_4 = arith.constant 0 : index
    %c0_5 = arith.constant 0 : index
    %5 = vector.load %arg3[%c0_4, %c0_5] : memref<16x2xf32, #tpu.memory_space<vmem>>, vector<16x1xf32>
    %6 = vector.broadcast %5 : vector<16x1xf32> to vector<16x256xf32>
    %7 = arith.addf %4, %6 : vector<16x256xf32>
    %cst_6 = arith.constant 3.000000e+00 : f32
    %8 = vector.broadcast %cst_6 : f32 to vector<16x256xf32>
    %9 = arith.addf %7, %8 : vector<16x256xf32>
    %cst_7 = arith.constant 0.000000e+00 : f32
    %cst_8 = arith.constant 6.000000e+00 : f32
    %10 = vector.broadcast %cst_7 : f32 to vector<16x256xf32>
    %11 = arith.maximumf %10, %9 : vector<16x256xf32>
    %12 = vector.broadcast %cst_8 : f32 to vector<16x256xf32>
    %13 = arith.minimumf %12, %11 : vector<16x256xf32>
    %14 = arith.mulf %7, %13 : vector<16x256xf32>
    %cst_9 = arith.constant 0.166666672 : f32
    %15 = vector.broadcast %cst_9 : f32 to vector<16x256xf32>
    %16 = arith.mulf %14, %15 : vector<16x256xf32>
    %17 = vector.extract_strided_slice %3 {offsets = [16, 0], sizes = [8, 256], strides = [1, 1]} : vector<24x256xf32> to vector<8x256xf32>
    %c0_10 = arith.constant 0 : index
    %c0_11 = arith.constant 0 : index
    %18 = vector.load %arg4[%c0_10, %c0_11] : memref<8x2xf32, #tpu.memory_space<vmem>>, vector<8x1xf32>
    %19 = vector.broadcast %18 : vector<8x1xf32> to vector<8x256xf32>
    %20 = arith.addf %17, %19 : vector<8x256xf32>
    %c0_12 = arith.constant 0 : index
    %c0_13 = arith.constant 0 : index
    %21 = vector.load %arg5[%c0_12, %c0_13] : memref<16x9xf32, #tpu.memory_space<vmem>>, vector<16x9xf32>
    %22 = vector.extract_strided_slice %21 {offsets = [0, 0], sizes = [16, 1], strides = [1, 1]} : vector<16x9xf32> to vector<16x1xf32>
    %23 = vector.extract_strided_slice %21 {offsets = [0, 1], sizes = [16, 1], strides = [1, 1]} : vector<16x9xf32> to vector<16x1xf32>
    %24 = vector.extract_strided_slice %21 {offsets = [0, 2], sizes = [16, 1], strides = [1, 1]} : vector<16x9xf32> to vector<16x1xf32>
    %25 = vector.extract_strided_slice %21 {offsets = [0, 3], sizes = [16, 1], strides = [1, 1]} : vector<16x9xf32> to vector<16x1xf32>
    %26 = vector.extract_strided_slice %21 {offsets = [0, 4], sizes = [16, 1], strides = [1, 1]} : vector<16x9xf32> to vector<16x1xf32>
    %27 = vector.extract_strided_slice %21 {offsets = [0, 5], sizes = [16, 1], strides = [1, 1]} : vector<16x9xf32> to vector<16x1xf32>
    %28 = vector.extract_strided_slice %21 {offsets = [0, 6], sizes = [16, 1], strides = [1, 1]} : vector<16x9xf32> to vector<16x1xf32>
    %29 = vector.extract_strided_slice %21 {offsets = [0, 7], sizes = [16, 1], strides = [1, 1]} : vector<16x9xf32> to vector<16x1xf32>
    %30 = vector.extract_strided_slice %21 {offsets = [0, 8], sizes = [16, 1], strides = [1, 1]} : vector<16x9xf32> to vector<16x1xf32>
    %c0_14 = arith.constant 0 : index
    %c0_15 = arith.constant 0 : index
    %31 = vector.load %arg6[%c0_14, %c0_15] : memref<9x256xf32, #tpu.memory_space<vmem>>, vector<1x256xf32>
    %c1 = arith.constant 1 : index
    %c0_16 = arith.constant 0 : index
    %32 = vector.load %arg6[%c1, %c0_16] : memref<9x256xf32, #tpu.memory_space<vmem>>, vector<1x256xf32>
    %c2 = arith.constant 2 : index
    %c0_17 = arith.constant 0 : index
    %33 = vector.load %arg6[%c2, %c0_17] : memref<9x256xf32, #tpu.memory_space<vmem>>, vector<1x256xf32>
    %c3 = arith.constant 3 : index
    %c0_18 = arith.constant 0 : index
    %34 = vector.load %arg6[%c3, %c0_18] : memref<9x256xf32, #tpu.memory_space<vmem>>, vector<1x256xf32>
    %c5 = arith.constant 5 : index
    %c0_19 = arith.constant 0 : index
    %35 = vector.load %arg6[%c5, %c0_19] : memref<9x256xf32, #tpu.memory_space<vmem>>, vector<1x256xf32>
    %c6 = arith.constant 6 : index
    %c0_20 = arith.constant 0 : index
    %36 = vector.load %arg6[%c6, %c0_20] : memref<9x256xf32, #tpu.memory_space<vmem>>, vector<1x256xf32>
    %c7 = arith.constant 7 : index
    %c0_21 = arith.constant 0 : index
    %37 = vector.load %arg6[%c7, %c0_21] : memref<9x256xf32, #tpu.memory_space<vmem>>, vector<1x256xf32>
    %c8 = arith.constant 8 : index
    %c0_22 = arith.constant 0 : index
    %38 = vector.load %arg6[%c8, %c0_22] : memref<9x256xf32, #tpu.memory_space<vmem>>, vector<1x256xf32>
    %cst_23 = arith.constant 0.000000e+00 : f32
    %39 = vector.broadcast %cst_23 : f32 to vector<16x256xf32>
    %c17_i32 = arith.constant 17 : i32
    %40 = tpu.dynamic_rotate %16 by %c17_i32 dim 1 : vector<16x256xf32>, i32 -> vector<16x256xf32>
    %41 = vector.broadcast %31 : vector<1x256xf32> to vector<16x256xf32>
    %42 = arith.mulf %40, %41 : vector<16x256xf32>
    %43 = vector.broadcast %22 : vector<16x1xf32> to vector<16x256xf32>
    %44 = arith.mulf %42, %43 : vector<16x256xf32>
    %45 = arith.addf %39, %44 : vector<16x256xf32>
    %c16_i32 = arith.constant 16 : i32
    %46 = tpu.dynamic_rotate %16 by %c16_i32 dim 1 : vector<16x256xf32>, i32 -> vector<16x256xf32>
    %47 = vector.broadcast %32 : vector<1x256xf32> to vector<16x256xf32>
    %48 = arith.mulf %46, %47 : vector<16x256xf32>
    %49 = vector.broadcast %23 : vector<16x1xf32> to vector<16x256xf32>
    %50 = arith.mulf %48, %49 : vector<16x256xf32>
    %51 = arith.addf %45, %50 : vector<16x256xf32>
    %c15_i32 = arith.constant 15 : i32
    %52 = tpu.dynamic_rotate %16 by %c15_i32 dim 1 : vector<16x256xf32>, i32 -> vector<16x256xf32>
    %53 = vector.broadcast %33 : vector<1x256xf32> to vector<16x256xf32>
    %54 = arith.mulf %52, %53 : vector<16x256xf32>
    %55 = vector.broadcast %24 : vector<16x1xf32> to vector<16x256xf32>
    %56 = arith.mulf %54, %55 : vector<16x256xf32>
    %57 = arith.addf %51, %56 : vector<16x256xf32>
    %c1_i32 = arith.constant 1 : i32
    %58 = tpu.dynamic_rotate %16 by %c1_i32 dim 1 : vector<16x256xf32>, i32 -> vector<16x256xf32>
    %59 = vector.broadcast %34 : vector<1x256xf32> to vector<16x256xf32>
    %60 = arith.mulf %58, %59 : vector<16x256xf32>
    %61 = vector.broadcast %25 : vector<16x1xf32> to vector<16x256xf32>
    %62 = arith.mulf %60, %61 : vector<16x256xf32>
    %63 = arith.addf %57, %62 : vector<16x256xf32>
    %64 = vector.broadcast %26 : vector<16x1xf32> to vector<16x256xf32>
    %65 = arith.mulf %16, %64 : vector<16x256xf32>
    %66 = arith.addf %63, %65 : vector<16x256xf32>
    %c255_i32 = arith.constant 255 : i32
    %67 = tpu.dynamic_rotate %16 by %c255_i32 dim 1 : vector<16x256xf32>, i32 -> vector<16x256xf32>
    %68 = vector.broadcast %35 : vector<1x256xf32> to vector<16x256xf32>
    %69 = arith.mulf %67, %68 : vector<16x256xf32>
    %70 = vector.broadcast %27 : vector<16x1xf32> to vector<16x256xf32>
    %71 = arith.mulf %69, %70 : vector<16x256xf32>
    %72 = arith.addf %66, %71 : vector<16x256xf32>
    %c241_i32 = arith.constant 241 : i32
    %73 = tpu.dynamic_rotate %16 by %c241_i32 dim 1 : vector<16x256xf32>, i32 -> vector<16x256xf32>
    %74 = vector.broadcast %36 : vector<1x256xf32> to vector<16x256xf32>
    %75 = arith.mulf %73, %74 : vector<16x256xf32>
    %76 = vector.broadcast %28 : vector<16x1xf32> to vector<16x256xf32>
    %77 = arith.mulf %75, %76 : vector<16x256xf32>
    %78 = arith.addf %72, %77 : vector<16x256xf32>
    %c240_i32 = arith.constant 240 : i32
    %79 = tpu.dynamic_rotate %16 by %c240_i32 dim 1 : vector<16x256xf32>, i32 -> vector<16x256xf32>
    %80 = vector.broadcast %37 : vector<1x256xf32> to vector<16x256xf32>
    %81 = arith.mulf %79, %80 : vector<16x256xf32>
    %82 = vector.broadcast %29 : vector<16x1xf32> to vector<16x256xf32>
    %83 = arith.mulf %81, %82 : vector<16x256xf32>
    %84 = arith.addf %78, %83 : vector<16x256xf32>
    %c239_i32 = arith.constant 239 : i32
    %85 = tpu.dynamic_rotate %16 by %c239_i32 dim 1 : vector<16x256xf32>, i32 -> vector<16x256xf32>
    %86 = vector.broadcast %38 : vector<1x256xf32> to vector<16x256xf32>
    %87 = arith.mulf %85, %86 : vector<16x256xf32>
    %88 = vector.broadcast %30 : vector<16x1xf32> to vector<16x256xf32>
    %89 = arith.mulf %87, %88 : vector<16x256xf32>
    %90 = arith.addf %84, %89 : vector<16x256xf32>
    %c0_24 = arith.constant 0 : index
    %c1_25 = arith.constant 1 : index
    %91 = vector.load %arg3[%c0_24, %c1_25] : memref<16x2xf32, #tpu.memory_space<vmem>>, vector<16x1xf32>
    %92 = vector.broadcast %91 : vector<16x1xf32> to vector<16x256xf32>
    %93 = arith.addf %90, %92 : vector<16x256xf32>
    %cst_26 = arith.constant 3.000000e+00 : f32
    %94 = vector.broadcast %cst_26 : f32 to vector<16x256xf32>
    %95 = arith.addf %93, %94 : vector<16x256xf32>
    %cst_27 = arith.constant 0.000000e+00 : f32
    %cst_28 = arith.constant 6.000000e+00 : f32
    %96 = vector.broadcast %cst_27 : f32 to vector<16x256xf32>
    %97 = arith.maximumf %96, %95 : vector<16x256xf32>
    %98 = vector.broadcast %cst_28 : f32 to vector<16x256xf32>
    %99 = arith.minimumf %98, %97 : vector<16x256xf32>
    %100 = arith.mulf %93, %99 : vector<16x256xf32>
    %cst_29 = arith.constant 0.166666672 : f32
    %101 = vector.broadcast %cst_29 : f32 to vector<16x256xf32>
    %102 = arith.mulf %100, %101 : vector<16x256xf32>
    %cst_30 = arith.constant dense<0.000000e+00> : vector<16xf32>
    %103 = vector.multi_reduction <add>, %102, %cst_30 [1] : vector<16x256xf32> to vector<16xf32>
    %104 = vector.shape_cast %103 : vector<16xf32> to vector<16x1xf32>
    %cst_31 = arith.constant 3.906250e-03 : f32
    %105 = vector.broadcast %cst_31 : f32 to vector<16x1xf32>
    %106 = arith.mulf %104, %105 : vector<16x1xf32>
    %c0_32 = arith.constant 0 : index
    %c0_33 = arith.constant 0 : index
    %107 = vector.load %arg8[%c0_32, %c0_33] : memref<8x16xf32, #tpu.memory_space<vmem>>, vector<8x16xf32>
    %cst_34 = arith.constant dense<0.000000e+00> : vector<8x1xf32>
    %108 = tpu.matmul %107, %106, %cst_34 {dimension_numbers = #tpu.dot_dimension_numbers<[1], [0], [0], [1], [0, 0, 1, 1], [], []>} : vector<8x16xf32>, vector<16x1xf32>, vector<8x1xf32> -> vector<8x1xf32>
    %c0_35 = arith.constant 0 : index
    %c0_36 = arith.constant 0 : index
    %109 = vector.load %arg9[%c0_35, %c0_36] : memref<8x1xf32, #tpu.memory_space<vmem>>, vector<8x1xf32>
    %110 = arith.addf %108, %109 : vector<8x1xf32>
    %cst_37 = arith.constant 0.000000e+00 : f32
    %111 = vector.broadcast %cst_37 : f32 to vector<8x1xf32>
    %112 = arith.maximumf %110, %111 : vector<8x1xf32>
    %c0_38 = arith.constant 0 : index
    %c0_39 = arith.constant 0 : index
    %113 = vector.load %arg10[%c0_38, %c0_39] : memref<16x8xf32, #tpu.memory_space<vmem>>, vector<16x8xf32>
    %cst_40 = arith.constant dense<0.000000e+00> : vector<16x1xf32>
    %114 = tpu.matmul %113, %112, %cst_40 {dimension_numbers = #tpu.dot_dimension_numbers<[1], [0], [0], [1], [0, 0, 1, 1], [], []>} : vector<16x8xf32>, vector<8x1xf32>, vector<16x1xf32> -> vector<16x1xf32>
    %cst_41 = arith.constant 3.000000e+00 : f32
    %115 = vector.broadcast %cst_41 : f32 to vector<16x1xf32>
    %116 = arith.addf %114, %115 : vector<16x1xf32>
    %cst_42 = arith.constant 0.000000e+00 : f32
    %cst_43 = arith.constant 6.000000e+00 : f32
    %117 = vector.broadcast %cst_42 : f32 to vector<16x1xf32>
    %118 = arith.maximumf %117, %116 : vector<16x1xf32>
    %119 = vector.broadcast %cst_43 : f32 to vector<16x1xf32>
    %120 = arith.minimumf %119, %118 : vector<16x1xf32>
    %cst_44 = arith.constant 0.166666672 : f32
    %121 = vector.broadcast %cst_44 : f32 to vector<16x1xf32>
    %122 = arith.mulf %120, %121 : vector<16x1xf32>
    %123 = vector.broadcast %122 : vector<16x1xf32> to vector<16x256xf32>
    %124 = arith.mulf %102, %123 : vector<16x256xf32>
    %c0_45 = arith.constant 0 : index
    %c0_46 = arith.constant 0 : index
    %125 = vector.load %arg12[%c0_45, %c0_46] : memref<8x16xf32, #tpu.memory_space<vmem>>, vector<8x16xf32>
    %cst_47 = arith.constant dense<0.000000e+00> : vector<8x256xf32>
    %126 = tpu.matmul %125, %124, %cst_47 {dimension_numbers = #tpu.dot_dimension_numbers<[1], [0], [0], [1], [0, 0, 1, 1], [], []>} : vector<8x16xf32>, vector<16x256xf32>, vector<8x256xf32> -> vector<8x256xf32>
    %c0_48 = arith.constant 0 : index
    %c1_49 = arith.constant 1 : index
    %127 = vector.load %arg4[%c0_48, %c1_49] : memref<8x2xf32, #tpu.memory_space<vmem>>, vector<8x1xf32>
    %128 = vector.broadcast %127 : vector<8x1xf32> to vector<8x256xf32>
    %129 = arith.addf %126, %128 : vector<8x256xf32>
    %130 = arith.addf %129, %20 : vector<8x256xf32>
    %cst_50 = arith.constant 3.000000e+00 : f32
    %131 = vector.broadcast %cst_50 : f32 to vector<8x256xf32>
    %132 = arith.addf %130, %131 : vector<8x256xf32>
    %cst_51 = arith.constant 0.000000e+00 : f32
    %cst_52 = arith.constant 6.000000e+00 : f32
    %133 = vector.broadcast %cst_51 : f32 to vector<8x256xf32>
    %134 = arith.maximumf %133, %132 : vector<8x256xf32>
    %135 = vector.broadcast %cst_52 : f32 to vector<8x256xf32>
    %136 = arith.minimumf %135, %134 : vector<8x256xf32>
    %137 = arith.mulf %130, %136 : vector<8x256xf32>
    %cst_53 = arith.constant 0.166666672 : f32
    %138 = vector.broadcast %cst_53 : f32 to vector<8x256xf32>
    %139 = arith.mulf %137, %138 : vector<8x256xf32>
    %c0_54 = arith.constant 0 : index
    %c0_55 = arith.constant 0 : index
    %c0_56 = arith.constant 0 : index
    %140 = vector.load %arg13[%c0_54, %c0_55, %c0_56] : memref<1x8x256xf32, #tpu.memory_space<vmem>>, vector<1x8x256xf32>
    %141 = vector.shape_cast %140 : vector<1x8x256xf32> to vector<8x256xf32>
    %142 = vector.shape_cast %139 : vector<8x256xf32> to vector<1x8x256xf32>
    tpu.vector_store %arg13[%c0_54, %c0_55, %c0_56], %142 {strides = array<i32>} : memref<1x8x256xf32, #tpu.memory_space<vmem>>, vector<1x8x256xf32>,
    return
  }
  func.func @transform_0(%arg0: i32) -> (i32, i32, i32) {
    %c0_i32 = arith.constant 0 : i32
    %c0_i32_0 = arith.constant 0 : i32
    %c0_i32_1 = arith.constant 0 : i32
    return %arg0, %c0_i32, %c0_i32_0 : i32, i32, i32
  }
  func.func @transform_1(%arg0: i32) -> (i32, i32) {
    %c0_i32 = arith.constant 0 : i32
    %c0_i32_0 = arith.constant 0 : i32
    %c0_i32_1 = arith.constant 0 : i32
    return %c0_i32, %c0_i32_0 : i32, i32
  }
  func.func @transform_2(%arg0: i32) -> (i32, i32) {
    %c0_i32 = arith.constant 0 : i32
    %c0_i32_0 = arith.constant 0 : i32
    %c0_i32_1 = arith.constant 0 : i32
    return %c0_i32, %c0_i32_0 : i32, i32
  }
  func.func @transform_3(%arg0: i32) -> (i32, i32) {
    %c0_i32 = arith.constant 0 : i32
    %c0_i32_0 = arith.constant 0 : i32
    %c0_i32_1 = arith.constant 0 : i32
    return %c0_i32, %c0_i32_0 : i32, i32
  }
  func.func @transform_4(%arg0: i32) -> (i32, i32) {
    %c0_i32 = arith.constant 0 : i32
    %c0_i32_0 = arith.constant 0 : i32
    %c0_i32_1 = arith.constant 0 : i32
    return %c0_i32, %c0_i32_0 : i32, i32
  }
  func.func @transform_5(%arg0: i32) -> (i32, i32) {
    %c0_i32 = arith.constant 0 : i32
    %c0_i32_0 = arith.constant 0 : i32
    %c0_i32_1 = arith.constant 0 : i32
    return %c0_i32, %c0_i32_0 : i32, i32
  }
  func.func @transform_6(%arg0: i32) -> (i32, i32) {
    %c0_i32 = arith.constant 0 : i32
    %c0_i32_0 = arith.constant 0 : i32
    %c0_i32_1 = arith.constant 0 : i32
    return %c0_i32, %c0_i32_0 : i32, i32
  }
  func.func @transform_7(%arg0: i32) -> (i32, i32) {
    %c0_i32 = arith.constant 0 : i32
    %c0_i32_0 = arith.constant 0 : i32
    %c0_i32_1 = arith.constant 0 : i32
    return %c0_i32, %c0_i32_0 : i32, i32
  }
  func.func @transform_8(%arg0: i32) -> (i32, i32) {
    %c0_i32 = arith.constant 0 : i32
    %c0_i32_0 = arith.constant 0 : i32
    %c0_i32_1 = arith.constant 0 : i32
    return %c0_i32, %c0_i32_0 : i32, i32
  }
  func.func @transform_9(%arg0: i32) -> (i32, i32) {
    %c0_i32 = arith.constant 0 : i32
    %c0_i32_0 = arith.constant 0 : i32
    %c0_i32_1 = arith.constant 0 : i32
    return %c0_i32, %c0_i32_0 : i32, i32
  }
  func.func @transform_10(%arg0: i32) -> (i32, i32) {
    %c0_i32 = arith.constant 0 : i32
    %c0_i32_0 = arith.constant 0 : i32
    %c0_i32_1 = arith.constant 0 : i32
    return %c0_i32, %c0_i32_0 : i32, i32
  }
  func.func @transform_11(%arg0: i32) -> (i32, i32) {
    %c0_i32 = arith.constant 0 : i32
    %c0_i32_0 = arith.constant 0 : i32
    %c0_i32_1 = arith.constant 0 : i32
    return %c0_i32, %c0_i32_0 : i32, i32
  }
  func.func @transform_12(%arg0: i32) -> (i32, i32, i32) {
    %c0_i32 = arith.constant 0 : i32
    %c0_i32_0 = arith.constant 0 : i32
    %c0_i32_1 = arith.constant 0 : i32
    return %arg0, %c0_i32, %c0_i32_0 : i32, i32, i32
  }
}

</mosaic_0001>

<bundles_post_ra>
// kernel: tpu_custom_call.1
= control target key start
LH: loop header
LB: loop body
LE: loop exit
PB: predicated region body
PF: predicated region fallthrough
CT: control target
= control target key end

     0   :  { %s2131_s0 = inlined_call_operand.vmem [shape: f32[2,4,256], index: 0, kind: input, shape index: {}]   ;;  %s2132_s1 = inlined_call_operand.vmem [shape: f32[24,4], index: 1, kind: input, shape index: {}]   ;;  %s2133_s2 = inlined_call_operand.vmem [shape: f32[16,2], index: 2, kind: input, shape index: {}]   ;;  %s2134_s3 = inlined_call_operand.vmem [shape: f32[8,2], index: 3, kind: input, shape index: {}]   ;;  %s2135_s4 = inlined_call_operand.vmem [shape: f32[16,9], index: 4, kind: input, shape index: {}]   ;;  %s2136_s5 = inlined_call_operand.vmem [shape: f32[9,256], index: 5, kind: input, shape index: {}]   ;;  %s2137_s6 = inlined_call_operand.vmem [shape: f32[256,1], index: 6, kind: input, shape index: {}]   ;;  %s2138_s7 = inlined_call_operand.vmem [shape: f32[8,16], index: 7, kind: input, shape index: {}]   ;;  %s2139_s8 = inlined_call_operand.vmem [shape: f32[8,1], index: 8, kind: input, shape index: {}]   ;;  %s2140_s9 = inlined_call_operand.vmem [shape: f32[16,8], index: 9, kind: input, shape index: {}]   ;;  %s2141_s10 = inlined_call_operand.vmem [shape: f32[1,256], index: 10, kind: input, shape index: {}]   ;;  %s2142_s11 = inlined_call_operand.vmem [shape: f32[8,16], index: 11, kind: input, shape index: {}]   ;;  %s2143_s12 = inlined_call_operand.hbm [shape: f32[2,8,256], index: 12, kind: output, shape index: {}]  }
   0x1   :  { %2144 = sst [smem:[#allocation5_spill]] %s2131_s0 }
   0x2   :  { %17 = vsyncpa [#allocation3], 0 }
   0x3   :  { %19 = vsyncpa [#allocation3 + $0x1], 0  ;;  %s1609_s6 = smov 0   ;;  %s1611_s21 = smov 0  }
   0x4   :  { %s1613_s22 = smov 0   ;;  %s1615_s23 = smov 0  }
   0x5 LB: > { %s1630_s10 = sadd.s32 4294967295, %s1522_s23   ;;  %s1337_s24 = sadd.s32 4294967294, %s1522_s23   ;;  %s1522_s23 = sphi %s1615_s23, %s2151_s23   ;;  %s1518_s22 = sphi %s1613_s22, %s2150_s22   ;;  %s1514_s21 = sphi %s1611_s21, %s2149_s21   ;;  %s1510_s6 = sphi %s1609_s6, %s2148_s6  }
   0x6   : > { %s1634_s25 = sadd.s32 1, %s1522_s23   ;;  %s289_s26 = sadd.s32 1, %s1518_s22 }
   0x7   : > { %s286_s27 = ssub.s32 %s1522_s23, %s1634_s25  ;;  %p299_p0 = scmp.ne.s32.totalorder %s1518_s22, %s1514_s21 }
   0x8   : > { %p287_p1 = scmp.eq.s32.totalorder %s286_s27, 0  ;;  %p300_p2 = scmp.eq.s32.totalorder %s1630_s10, 1 }
   0x9   : > { %p305_p3 = scmp.ne.s32.totalorder %s1514_s21, %s1510_s6  ;;  %p306_p4 = scmp.eq.s32.totalorder %s1337_s24, 1 }
   0xa   : > { %s1645_s28 = scalar_select %p287_p1, %s1518_s22, %s289_s26  }
   0xb   : > { %p1647_p5 = por %p300_p2, %p299_p0  ;;  %p1651_p6 = por %p306_p4, %p305_p3 }
   0xc   : > { %p1340_p7 = scmp.ge.s32.totalorder %s1522_s23, 1  ;;  %p365_p8 = scmp.lt.s32.totalorder %s1522_s23, 3 }
   0xe   : > { %p366_p9 = pnand %p1340_p7, %p365_p8 }
   0xf   : > { %p407_p10 = scmp.lt.s32.totalorder (!%p366_p9), %s1630_s10, 1  ;;  %s2147_s0 = sld [smem:[#allocation5_spill]] (!%p366_p9) }
  0x10   : > { %369 = sbr.rel (%p366_p9) target bundleno = 1345 (0x541), region = 68  ;;  %s1534_s19 = smov (!%p366_p9), 16  }
  0x11   : > { %s1535_s20 = smov (!%p366_p9), 17   ;;  %s1536_s24 = smov (!%p366_p9), 15  }
  0x12   : > { %s1537_s26 = smov (!%p366_p9), 1   ;;  %s1539_s13 = smov (!%p366_p9), 113  }
  0x13   : > { %s1540_s14 = smov (!%p366_p9), 112   ;;  %s1541_s15 = smov (!%p366_p9), 111  }
  0x15   : > { %v1524_v0 = vmov 0.0   ;;  %v1662_v1 = vld [vmem:[%s2133_s2 + $0x8] sm:$0xff]  ;;  %s408_s17 = scalar_select %p407_p10, %s1630_s10, 1  ;;  %v1525_v3 = vmov 0   ;;  %v1675_v4 = vld [vmem:[%s2133_s2] sm:$0xff]  ;;  %vm428_vm0 = vcmask 1043456  }
  0x16   : > { %497 = vmatprep.mubr.f32.mxu0 %v1524_v0  ;;  %v561_v2 = vld [vmem:[%s2135_s4 + $0x8] sm:$0xff]  ;;  %1373 = vmatprep.subr.mxu1 %v1524_v0  ;;  %v1526_v7 = vmov 1   ;;  %v413_v8 = vld [vmem:[%s2132_s1] sm:$0xff]  ;;  %vm418_vm1 = vcmask 31744   ;;  %v1527_v11 = vmov 2   ;;  %v1528_v12 = vmov 3  }
  0x17   : > { %1443 = vset.pattern.permute.xlu0 %v1525_v3  ;;  %1444 = vset.pattern.permute.xlu1 %v1525_v3  ;;  %s1365_s18 = sshll.u32 %s408_s17, 3  ;;  %v1688_v9 = vld [vmem:[%s2135_s4] sm:$0xff]  ;;  %v414_v10 = vld [vmem:[%s2132_s1 + $0x8] sm:$0xff]  ;;  %v1529_v13 = vmov 4   ;;  %v1530_v14 = vmov 5   ;;  %v1531_v15 = vmov 6  }
  0x18   : > { %525 = vperm.xlu0 %1443, %v1662_v1   ;;  %614 = vperm.xlu1 %1444, %v561_v2   ;;  %s411_s27 = scalar_lea.vmem %s2147_s0, %s1365_s18  ;;  %v1532_v16 = vmov 7   ;;  %v1533_v17 = vmov 8   ;;  %vm1542_vm10 = vmmov 0   ;;  %vm991_vm11 = vcmask 130048  }
  0x19   : > { %v412_v5 = vld [vmem:[%s411_s27] sm:$0xff]  ;;  %s1538_s27 = smov 127   ;;  %1377 = vmatprep.mubr.msk.f32.mxu1 %vm1542_vm10, %v1524_v0  ;;  %vm1068_vm12 = vcmask 64512  }
  0x1a   : > { %v417_v6 = vcombine.high %v412_v5, %v412_v5 }
  0x1c   : > { %520 = vperm.xlu0 %1443, %v1675_v4   ;;  %1445 = vset.pattern.permute.xlu1 %v1526_v7 }
  0x1d   : > { %658 = vperm.xlu1 %1445, %v561_v2   ;;  %1344 = vmatprep.subr.msk.mxu0 %vm428_vm0, %v417_v6 }
  0x1e   : > { %1345 = vmatpush1.msk.msra.mxu0 %vm428_vm0, %v412_v5 }
  0x1f   : > { %1346 = vmatmul.mubr.msk.f32.vlgmr.msra.gmra.mxu0 %vm418_vm1, %v413_v8 }
  0x20   : > { %609 = vperm.xlu0 %1443, %v1688_v9   ;;  %503 = vmatprep.mubr.f32.mxu0 %v1524_v0 }
  0x21   : > { %654 = vperm.xlu1 %1445, %v1688_v9  }
  0x23   : > { %1347 = vmatmul.mubr.msk.f32.gmra.mxu0 %vm418_vm1, %v414_v10 }
  0x24   : > { %1446 = vset.pattern.permute.xlu0 %v1527_v11  ;;  %509 = vmatprep.mubr.f32.mxu0 %v1524_v0 }
  0x25   : > { %1447 = vset.pattern.permute.xlu1 %v1528_v12  ;;  %702 = vperm.xlu0 %1446, %v561_v2  }
  0x26   : > { %746 = vperm.xlu1 %1447, %v561_v2  }
  0x29   : > { %698 = vperm.xlu0 %1446, %v1688_v9  }
  0x2a   : > { %1449 = vset.pattern.permute.xlu1 %v1529_v13 }
  0x2b   : > { %762 = vperm.xlu1 %1449, %v561_v2  }
  0x2d   : > { %1448 = vset.pattern.permute.xlu0 %v1528_v12 }
  0x2e   : > { %742 = vperm.xlu0 %1448, %v1688_v9  }
  0x2f   : > { %758 = vperm.xlu1 %1449, %v1688_v9  }
  0x32   : > { %1450 = vset.pattern.permute.xlu0 %v1530_v14 }
  0x33   : > { %806 = vperm.xlu0 %1450, %v561_v2   ;;  %1451 = vset.pattern.permute.xlu1 %v1531_v15 }
  0x34   : > { %850 = vperm.xlu1 %1451, %v561_v2  }
  0x37   : > { %802 = vperm.xlu0 %1450, %v1688_v9  }
  0x38   : > { %1453 = vset.pattern.permute.xlu1 %v1532_v16  ;;  %v562_v16 = vld [vmem:[%s2136_s5] ss:$8 sm:$0x3] }
  0x39   : > { %894 = vperm.xlu1 %1453, %v561_v2  }
  0x3b   : > { %1452 = vset.pattern.permute.xlu0 %v1531_v15 }
  0x3c   : > { %846 = vperm.xlu0 %1452, %v1688_v9  }
  0x3d   : > { %890 = vperm.xlu1 %1453, %v1688_v9  }
  0x40   : > { %1454 = vset.pattern.permute.xlu0 %v1533_v17 }
  0x41   : > { %938 = vperm.xlu0 %1454, %v561_v2   ;;  %1455 = vset.pattern.permute.xlu1 %v1526_v7 }
  0x93   : > { %v1706_v18 = vpop.permute.xlu1 %614  ;;  %v526_v21 = vpop.permute.xlu0 %525 }
  0x97   : > { %v521_v23 = vpop.permute.xlu0 %520 }
  0x98   : > { %v1708_v19 = vpop.permute.xlu1 %658 }
  0x9b   : > { %v1765_v56 = vpop.permute.xlu0 %609 }
  0x9c   : > { %v1710_v20 = vpop.permute.xlu1 %654 }
  0xa0   : > { %v1770_v57 = vpop.permute.xlu0 %702 }
  0xa1   : > { %v1712_v22 = vpop.permute.xlu1 %746 }
  0xa4   : > { %v1773_v58 = vpop.permute.xlu0 %698 }
  0xa6   : > { %v1714_v29 = vpop.permute.xlu1 %762 }
  0xa9   : > { %v1776_v59 = vpop.permute.xlu0 %742 }
  0xaa   : > { %v759_v37 = vpop.permute.xlu1 %758 }
  0xae   : > { %v1778_v60 = vpop.permute.xlu0 %806 }
  0xaf   : > { %v1780_v61 = vpop.permute.xlu1 %850 }
  0xb2   : > { %v1782_v62 = vpop.permute.xlu0 %802 }
  0xb4   : > { %v1784_v63 = vpop.permute.xlu1 %894 }
  0xb7   : > { %v1786_v2 = vpop.permute.xlu0 %846 }
  0xbc   : > { %v1790_v5 = vpop.permute.xlu0 %938 }
  0xdf   : > { %v499_v24 = vpop.f32.mrf.mxu0 }
  0xe0   : > { %v528_v25 = vadd.f32 %v521_v23, %v499_v24 }
  0xe1   : > { %v501_v26 = vpop.f32.mrf.mxu0 }
  0xe2   : > { %v532_v27 = vadd.f32 3.0, %v528_v25  ;;  %v529_v28 = vadd.f32 %v521_v23, %v501_v26  ;;  %v1351_v23 = vld [vmem:[%s2136_s5 + $0x3] ss:$8 sm:$0x3] }
  0xe3   : > { %v505_v34 = vpop.f32.mrf.mxu0 }
  0xe4   : > { %v536_v30 = vmax.f32 %v532_v27, 0.0  ;;  %v533_v31 = vadd.f32 3.0, %v529_v28  ;;  %v530_v40 = vadd.f32 %v526_v21, %v505_v34 }
  0xe5   : > { %v507_v48 = vpop.f32.mrf.mxu0 }
  0xe6   : > { %v540_v32 = vmin.f32 %v536_v30, 6.0  ;;  %v537_v33 = vmax.f32 %v533_v31, 0.0  ;;  %v534_v43 = vadd.f32 3.0, %v530_v40  ;;  %v531_v50 = vadd.f32 %v526_v21, %v507_v48  ;;  %v1349_v21 = vld [vmem:[%s2136_s5 + $0x1] ss:$8 sm:$0x3] }
  0xe8   : > { %v544_v35 = vmul.f32 %v540_v32, %v528_v25  ;;  %v541_v36 = vmin.f32 %v537_v33, 6.0  ;;  %v538_v45 = vmax.f32 %v534_v43, 0.0  ;;  %v535_v51 = vadd.f32 3.0, %v531_v50 }
  0xea   : > { %v548_v38 = vmul.f32 0.16666667, %v544_v35  ;;  %v545_v39 = vmul.f32 %v541_v36, %v529_v28  ;;  %v542_v46 = vmin.f32 %v538_v45, 6.0  ;;  %v539_v52 = vmax.f32 %v535_v51, 0.0 }
  0xeb   : > { %v1350_v28 = vld [vmem:[%s2136_s5 + $0x2] ss:$8 sm:$0x3] }
  0xec   : > { %v549_v41 = vmul.f32 0.16666667, %v545_v39  ;;  %v1716_v42 = vmul.f32 %v759_v37, %v548_v38  ;;  %625 = vrot.lane.b32.xlu0 %v548_v38, %s1534_s19  ;;  %577 = vrot.lane.b32.xlu1 %v548_v38, %s1535_s20  ;;  %v546_v47 = vmul.f32 %v542_v46, %v530_v40  ;;  %v543_v53 = vmin.f32 %v539_v52, 6.0 }
  0xee   : > { %v1720_v44 = vmul.f32 %v759_v37, %v549_v41  ;;  %v1729_v49 = vmul.f32 0.16666667, %v546_v47  ;;  %v547_v54 = vmul.f32 %v543_v53, %v531_v50 }
  0xf0   : > { %669 = vrot.lane.b32.xlu0 %v548_v38, %s1536_s24  ;;  %713 = vrot.lane.b32.xlu1 %v548_v38, %s1537_s26  ;;  %v1745_v55 = vmul.f32 0.16666667, %v547_v54 }
  0xf4   : > { %773 = vrot.lane.b32.xlu0 %v548_v38, %s1538_s27  ;;  %817 = vrot.lane.b32.xlu1 %v548_v38, %s1539_s13 }
  0xf8   : > { %861 = vrot.lane.b32.xlu1 %v548_v38, %s1540_s14  ;;  %717 = vrot.lane.b32.xlu0 %v549_v41, %s1537_s26 }
  0xfc   : > { %821 = vrot.lane.b32.xlu0 %v549_v41, %s1539_s13  ;;  %581 = vrot.lane.b32.xlu1 %v549_v41, %s1535_s20 }
 0x100   : > { %629 = vrot.lane.b32.xlu1 %v549_v41, %s1534_s19  ;;  %579 = vrot.lane.b32.xlu0 %v1729_v49, %s1535_s20 }
 0x104   : > { %673 = vrot.lane.b32.xlu1 %v549_v41, %s1536_s24  ;;  %671 = vrot.lane.b32.xlu0 %v1729_v49, %s1536_s24 }
 0x108   : > { %777 = vrot.lane.b32.xlu1 %v549_v41, %s1538_s27  ;;  %715 = vrot.lane.b32.xlu0 %v1729_v49, %s1537_s26 }
 0x10c   : > { %865 = vrot.lane.b32.xlu1 %v549_v41, %s1540_s14  ;;  %819 = vrot.lane.b32.xlu0 %v1729_v49, %s1539_s13 }
 0x110   : > { %627 = vrot.lane.b32.xlu1 %v1729_v49, %s1534_s19  ;;  %907 = vrot.lane.b32.xlu0 %v1729_v49, %s1541_s15 }
 0x114   : > { %775 = vrot.lane.b32.xlu1 %v1729_v49, %s1538_s27  ;;  %631 = vrot.lane.b32.xlu0 %v1745_v55, %s1534_s19 }
 0x118   : > { %863 = vrot.lane.b32.xlu1 %v1729_v49, %s1540_s14  ;;  %934 = vperm.xlu0 %1454, %v1688_v9   ;;  %v585_v9 = vlaneseq }
 0x11a   : > { %v594_v12 = vshrl.u32 %v585_v9, 7  ;;  %v1798_v15 = vand.u32 127, %v585_v9 }
 0x11c   : > { %867 = vrot.lane.b32.xlu0 %v1745_v55, %s1540_s14  ;;  %583 = vrot.lane.b32.xlu1 %v1745_v55, %s1535_s20  ;;  %v1803_v17 = vsub.s32 0, %v594_v12  ;;  %v1811_v24 = vsub.s32 1, %v594_v12  ;;  %vm587_vm2 = vcmp.lt.s32.totalorder %v1798_v15, 17  ;;  %vm721_vm3 = vcmp.lt.s32.totalorder %v1798_v15, 1 }
 0x11d   : > { %1456 = vset.pattern.permute.xlu0 %v1526_v7  ;;  %vm633_vm4 = vcmp.lt.s32.totalorder %v1798_v15, 16  ;;  %vm677_vm5 = vcmp.lt.s32.totalorder %v1798_v15, 15  ;;  %vm781_vm6 = vcmp.lt.s32.totalorder %v1798_v15, 127  ;;  %vm825_vm7 = vcmp.lt.s32.totalorder %v1798_v15, 113 }
 0x11e   : > { %v1818_v27 = vrot.slane %v562_v16, %v1803_v17  ;;  %v1824_v30 = vrot.slane %v562_v16, %v1811_v24  ;;  %v1828_v31 = vrot.slane %v1349_v21, %v1803_v17  ;;  %v1831_v32 = vrot.slane %v1349_v21, %v1811_v24 }
 0x11f   : > { %v1834_v33 = vrot.slane %v1351_v23, %v1803_v17  ;;  %v1841_v36 = vrot.slane %v1351_v23, %v1811_v24  ;;  %v1847_v39 = vrot.slane %v1350_v28, %v1803_v17  ;;  %v1850_v40 = vrot.slane %v1350_v28, %v1811_v24 }
 0x120   : > { %909 = vrot.lane.b32.xlu0 %v549_v41, %s1541_s15  ;;  %905 = vrot.lane.b32.xlu1 %v548_v38, %s1541_s15  ;;  %vm869_vm8 = vcmp.lt.s32.totalorder %v1798_v15, 112  ;;  %vm913_vm9 = vcmp.lt.s32.totalorder %v1798_v15, 111 }
 0x124   : > { %675 = vrot.lane.b32.xlu1 %v1745_v55, %s1536_s24  ;;  %950 = vperm.xlu0 %1456, %v1675_v4   ;;  %v1788_v4 = vpop.permute.xlu1 %890 }
 0x128   : > { %719 = vrot.lane.b32.xlu1 %v1745_v55, %s1537_s26  ;;  %1458 = vset.pattern.permute.xlu0 %v1525_v3 }
 0x12c   : > { %779 = vrot.lane.b32.xlu1 %v1745_v55, %s1538_s27  ;;  %s1543_s27 = smov [#allocation2]  }
 0x130   : > { %823 = vrot.lane.b32.xlu1 %v1745_v55, %s1539_s13  ;;  %s404_s13 = sand.u32 1, %s1514_s21  }
 0x131   : > { %s1341_s14 = sshll.u32 %s404_s13, 4  ;;  %s1264_s24 = scalar_lea.sflag [#allocation3], %s404_s13 }
 0x132   : > { %s406_s16 = scalar_lea.vmem [#allocation2], %s1341_s14 }
 0x133   : > { %s1278_s17 = sshll.u32 %s406_s16, 4  ;;  %s1279_s17 = int_to_ptr.vmem [resolvable:$true] %s1278_s17 }
 0x134   : > { %911 = vrot.lane.b32.xlu1 %v1745_v55, %s1541_s15  ;;  %s1366_s15 = sshll.u32 %s1630_s10, 8  ;;  %s1462_s26 = scalar_lea.vmem %s1279_s17, 256 }
 0x135   : > { %s1276_s20 = scalar_lea.hbm %s2143_s12, %s1366_s15  ;;  %p1463_p11 = scmp.ne.s32.totalorder %s1279_s17, %s1462_s26 }
 0x136   : > { %s1466_s10 = sshll.u32 %s1543_s27, 4  ;;  %s1467_s10 = int_to_ptr.vmem [resolvable:$false] %s1466_s10 }
 0x137   : > { %p1464_p12 = pnand %p1463_p11, %p1647_p5  ;;  %s1468_s14 = scalar_lea.vmem %s1467_s10, 512 }
 0x138   : > { %954 = vperm.xlu1 %1455, %v1662_v1   ;;  %p1469_p0 = scmp.lt.s32.totalorder %s1279_s17, %s1467_s10  ;;  %p1470_p1 = scmp.lt.s32.totalorder %s1468_s14, %s1462_s26 }
 0x139   : > { %p1465_p13 = pneg %p1464_p12 }
 0x13a   : > { %p1471_p2 = por %p1470_p1, %p1469_p0 }
 0x13c   : > { %1457 = vset.pattern.permute.xlu1 %v1525_v3  ;;  %p1472_p3 = pnand %p1471_p2, %p1465_p13 }
 0x15e   : > { %v626_v1 = vpop.permute.xlu0 %625  ;;  %v578_v6 = vpop.permute.xlu1 %577 }
 0x162   : > { %v670_v8 = vpop.permute.xlu0 %669  ;;  %v714_v3 = vpop.permute.xlu1 %713 }
 0x166   : > { %v1792_v10 = vpop.permute.xlu0 %773  ;;  %v1794_v11 = vpop.permute.xlu1 %817 }
 0x16a   : > { %v1796_v13 = vpop.permute.xlu1 %861  ;;  %v718_v14 = vpop.permute.xlu0 %717 }
 0x16b   : > { %v722_v41 = vsel %vm721_vm3, %v714_v3, %v718_v14  ;;  %v724_v43 = vsel %vm721_vm3, %v718_v14, %v714_v3 }
 0x16c   : > { %v738_v3 = vmul.f32 %v1841_v36, %v722_v41 }
 0x16e   : > { %v1813_v25 = vpop.permute.xlu0 %821  ;;  %v582_v26 = vpop.permute.xlu1 %581 }
 0x16f   : > { %v588_v34 = vsel %vm587_vm2, %v578_v6, %v582_v26  ;;  %v590_v35 = vsel %vm587_vm2, %v582_v26, %v578_v6  ;;  %v737_v6 = vmul.f32 %v1834_v33, %v724_v43 }
 0x170   : > { %v603_v47 = vmul.f32 %v1818_v27, %v590_v35  ;;  %v604_v48 = vmul.f32 %v1824_v30, %v588_v34 }
 0x172   : > { %v630_v37 = vpop.permute.xlu1 %629  ;;  %v1843_v38 = vpop.permute.xlu0 %579  ;;  %v617_v14 = vmul.f32 %v1765_v56, %v603_v47  ;;  %v618_v16 = vmul.f32 %v1765_v56, %v604_v48 }
 0x173   : > { %v634_v45 = vsel %vm633_vm4, %v626_v1, %v630_v37  ;;  %v636_v46 = vsel %vm633_vm4, %v630_v37, %v626_v1  ;;  %v749_v37 = vmul.f32 %v1776_v59, %v737_v6 }
 0x174   : > { %v649_v50 = vmul.f32 %v1828_v31, %v636_v46  ;;  %v650_v51 = vmul.f32 %v1831_v32, %v634_v45 }
 0x176   : > { %v661_v52 = vmul.f32 %v1710_v20, %v649_v50  ;;  %v662_v53 = vmul.f32 %v1710_v20, %v650_v51  ;;  %v674_v54 = vpop.permute.xlu1 %673  ;;  %v1872_v12 = vpop.permute.xlu0 %671 }
 0x177   : > { %v678_v1 = vsel %vm677_vm5, %v670_v8, %v674_v54  ;;  %v680_v9 = vsel %vm677_vm5, %v674_v54, %v670_v8  ;;  %v750_v8 = vmul.f32 %v1776_v59, %v738_v3  ;;  %v1352_v59 = vld [vmem:[%s2136_s5 + $0x5] ss:$8 sm:$0x3] }
 0x178   : > { %v693_v21 = vmul.f32 %v1847_v39, %v680_v9  ;;  %v694_v20 = vmul.f32 %v1850_v40, %v678_v1  ;;  %v665_v23 = vadd.f32 %v661_v52, %v617_v14  ;;  %v666_v26 = vadd.f32 %v662_v53, %v618_v16 }
 0x179   : > { %v1906_v6 = vrot.slane %v1352_v59, %v1811_v24 }
 0x17a   : > { %v705_v28 = vmul.f32 %v1773_v58, %v693_v21  ;;  %v706_v34 = vmul.f32 %v1773_v58, %v694_v20  ;;  %v778_v35 = vpop.permute.xlu1 %777  ;;  %v1882_v45 = vpop.permute.xlu0 %715  ;;  %v826_v21 = vsel %vm825_vm7, %v1794_v11, %v1813_v25  ;;  %v828_v20 = vsel %vm825_vm7, %v1813_v25, %v1794_v11 }
 0x17b   : > { %v782_v3 = vsel %vm781_vm6, %v1792_v10, %v778_v35  ;;  %v784_v1 = vsel %vm781_vm6, %v778_v35, %v1792_v10  ;;  %v1941_v11 = vmul.f32 %v1714_v29, %v1729_v49 }
 0x17c   : > { %v709_v41 = vadd.f32 %v705_v28, %v665_v23  ;;  %v710_v43 = vadd.f32 %v706_v34, %v666_v26  ;;  %v798_v26 = vmul.f32 %v1906_v6, %v784_v1  ;;  %v1354_v28 = vld [vmem:[%s2136_s5 + $0x7] ss:$8 sm:$0x3] }
 0x17d   : > { %v1955_v49 = vrot.slane %v1354_v28, %v1803_v17  ;;  %v1962_v1 = vrot.slane %v1354_v28, %v1811_v24 }
 0x17e   : > { %v753_v56 = vadd.f32 %v749_v37, %v709_v41  ;;  %v754_v46 = vadd.f32 %v750_v8, %v710_v43  ;;  %v866_v47 = vpop.permute.xlu1 %865  ;;  %v1886_v52 = vpop.permute.xlu0 %819 }
 0x180   : > { %v769_v48 = vadd.f32 %v1716_v42, %v753_v56  ;;  %v770_v50 = vadd.f32 %v1720_v44, %v754_v46  ;;  %v1353_v42 = vld [vmem:[%s2136_s5 + $0x6] ss:$8 sm:$0x3]  ;;  %v1903_v44 = vrot.slane %v1352_v59, %v1803_v17 }
 0x181   : > { %v1915_v9 = vrot.slane %v1353_v42, %v1803_v17  ;;  %v1918_v14 = vrot.slane %v1353_v42, %v1811_v24 }
 0x182   : > { %v628_v51 = vpop.permute.xlu1 %627  ;;  %v1893_v53 = vpop.permute.xlu0 %907  ;;  %v797_v10 = vmul.f32 %v1903_v44, %v782_v3  ;;  %v810_v3 = vmul.f32 %v1782_v62, %v798_v26 }
 0x183   : > { %v841_v25 = vmul.f32 %v1915_v9, %v826_v21  ;;  %v842_v37 = vmul.f32 %v1918_v14, %v828_v20 }
 0x184   : > { %v809_v42 = vmul.f32 %v1782_v62, %v797_v10  ;;  %v814_v21 = vadd.f32 %v810_v3, %v770_v50 }
 0x185   : > { %v854_v62 = vmul.f32 %v1786_v2, %v842_v37 }
 0x186   : > { %v1888_v58 = vpop.permute.xlu1 %775  ;;  %v632_v23 = vpop.permute.xlu0 %631 }
 0x187   : > { %v635_v8 = vsel %vm633_vm4, %v628_v51, %v632_v23  ;;  %v637_v41 = vsel %vm633_vm4, %v632_v23, %v628_v51  ;;  %v853_v51 = vmul.f32 %v1786_v2, %v841_v25  ;;  %v1355_v23 = vld [vmem:[%s2136_s5 + $0x10] ss:$8 sm:$0x3] }
 0x18a   : > { %v1896_v54 = vpop.permute.xlu1 %863 }
 0x18e   : > { %v584_v16 = vpop.permute.xlu1 %583 }
 0x18f   : > { %v589_v34 = vsel %vm587_vm2, %v1843_v38, %v584_v16  ;;  %v591_v35 = vsel %vm587_vm2, %v584_v16, %v1843_v38  ;;  %v1952_v38 = vmul.f32 %v1714_v29, %v1745_v55  ;;  %v870_v29 = vsel %vm869_vm8, %v1796_v13, %v866_v47 }
 0x190   : > { %v605_v56 = vmul.f32 %v1818_v27, %v591_v35  ;;  %v606_v46 = vmul.f32 %v1824_v30, %v589_v34  ;;  %v872_v55 = vsel %vm869_vm8, %v866_v47, %v1796_v13  ;;  %v651_v27 = vmul.f32 %v1828_v31, %v637_v41 }
 0x191   : > { %v652_v30 = vmul.f32 %v1831_v32, %v635_v8  ;;  %v813_v16 = vadd.f32 %v809_v42, %v769_v48  ;;  %v885_v32 = vmul.f32 %v1955_v49, %v870_v29  ;;  %v886_v47 = vmul.f32 %v1962_v1, %v872_v55 }
 0x192   : > { %v906_v43 = vpop.permute.xlu1 %905  ;;  %v619_v10 = vmul.f32 %v1706_v18, %v605_v56  ;;  %v620_v26 = vmul.f32 %v1706_v18, %v606_v46  ;;  %v663_v28 = vmul.f32 %v1708_v19, %v651_v27  ;;  %v1993_v34 = vrot.slane %v1355_v23, %v1803_v17 }
 0x193   : > { %v935_v59 = vpop.permute.xlu0 %934  ;;  %v664_v18 = vmul.f32 %v1708_v19, %v652_v30  ;;  %v1996_v35 = vrot.slane %v1355_v23, %v1811_v24  ;;  %v857_v8 = vadd.f32 %v853_v51, %v813_v16  ;;  %v858_v41 = vadd.f32 %v854_v62, %v814_v21 }
 0x194   : > { %v897_v24 = vmul.f32 %v1788_v4, %v885_v32  ;;  %v898_v46 = vmul.f32 %v1788_v4, %v886_v47 }
 0x195   : > { %v668_v56 = vadd.f32 %v664_v18, %v620_v26 }
 0x196   : > { %v676_v20 = vpop.permute.xlu1 %675  ;;  %v901_v16 = vadd.f32 %v897_v24, %v857_v8  ;;  %v902_v21 = vadd.f32 %v898_v46, %v858_v41 }
 0x197   : > { %v679_v13 = vsel %vm677_vm5, %v1872_v12, %v676_v20  ;;  %v681_v31 = vsel %vm677_vm5, %v676_v20, %v1872_v12  ;;  %v868_v2 = vpop.permute.xlu0 %867 }
 0x198   : > { %v695_v48 = vmul.f32 %v1847_v39, %v681_v31  ;;  %v696_v50 = vmul.f32 %v1850_v40, %v679_v13  ;;  %v667_v39 = vadd.f32 %v663_v28, %v619_v10  ;;  %v873_v26 = vsel %vm869_vm8, %v868_v2, %v1896_v54 }
 0x19a   : > { %v707_v12 = vmul.f32 %v1770_v57, %v695_v48  ;;  %v708_v25 = vmul.f32 %v1770_v57, %v696_v50  ;;  %v720_v37 = vpop.permute.xlu1 %719 }
 0x19b   : > { %v723_v40 = vsel %vm721_vm3, %v1882_v45, %v720_v37  ;;  %v725_v19 = vsel %vm721_vm3, %v720_v37, %v1882_v45  ;;  %v910_v17 = vpop.permute.xlu0 %909 }
 0x19c   : > { %v739_v57 = vmul.f32 %v1834_v33, %v725_v19  ;;  %v740_v42 = vmul.f32 %v1841_v36, %v723_v40  ;;  %v711_v3 = vadd.f32 %v707_v12, %v667_v39  ;;  %v712_v29 = vadd.f32 %v708_v25, %v668_v56 }
 0x19d   : > { %v914_v55 = vsel %vm913_vm9, %v906_v43, %v910_v17  ;;  %v916_v27 = vsel %vm913_vm9, %v910_v17, %v906_v43  ;;  %v888_v25 = vmul.f32 %v1962_v1, %v873_v26 }
 0x19e   : > { %v751_v30 = vmul.f32 %v1712_v22, %v739_v57  ;;  %v752_v45 = vmul.f32 %v1712_v22, %v740_v42  ;;  %v929_v51 = vmul.f32 %v1993_v34, %v914_v55  ;;  %v930_v4 = vmul.f32 %v1996_v35, %v916_v27  ;;  %v780_v62 = vpop.permute.xlu1 %779 }
 0x19f   : > { %v783_v33 = vsel %vm781_vm6, %v1888_v58, %v780_v62  ;;  %v785_v36 = vsel %vm781_vm6, %v780_v62, %v1888_v58  ;;  %v871_v22 = vsel %vm869_vm8, %v1896_v54, %v868_v2  ;;  %v951_v32 = vpop.permute.xlu0 %950  ;;  %v900_v42 = vmul.f32 %v1784_v63, %v888_v25 }
 0x1a0   : > { %v755_v43 = vadd.f32 %v751_v30, %v711_v3  ;;  %v756_v20 = vadd.f32 %v752_v45, %v712_v29  ;;  %v941_v23 = vmul.f32 %v935_v59, %v929_v51  ;;  %v942_v10 = vmul.f32 %v935_v59, %v930_v4 }
 0x1a1   : > { %v799_v13 = vmul.f32 %v1903_v44, %v783_v33  ;;  %v800_v31 = vmul.f32 %v1906_v6, %v785_v36  ;;  %v887_v12 = vmul.f32 %v1955_v49, %v871_v22 }
 0x1a2   : > { %v771_v58 = vadd.f32 %v1941_v11, %v755_v43  ;;  %v772_v47 = vadd.f32 %v1952_v38, %v756_v20  ;;  %v945_v48 = vadd.f32 %v941_v23, %v901_v16  ;;  %v946_v50 = vadd.f32 %v942_v10, %v902_v21  ;;  %v824_v59 = vpop.permute.xlu1 %823 }
 0x1a3   : > { %v811_v28 = vmul.f32 %v1778_v60, %v799_v13  ;;  %v812_v18 = vmul.f32 %v1778_v60, %v800_v31  ;;  %v827_v54 = vsel %vm825_vm7, %v1886_v52, %v824_v59  ;;  %v829_v44 = vsel %vm825_vm7, %v824_v59, %v1886_v52  ;;  %v990_v59 = vld [vmem:[%s2139_s8] sm:$0xff] }
 0x1a4   : > { %v957_v6 = vadd.f32 %v951_v32, %v945_v48  ;;  %v958_v2 = vadd.f32 %v951_v32, %v946_v50  ;;  %v843_v11 = vmul.f32 %v1915_v9, %v827_v54  ;;  %v844_v38 = vmul.f32 %v1918_v14, %v829_v44  ;;  %v1066_v48 = vld [vmem:[%s2140_s9] sm:$0xff]  ;;  %v415_v50 = vld [vmem:[%s2132_s1 + $0x10] sm:$0xff] }
 0x1a5   : > { %v815_v56 = vadd.f32 %v811_v28, %v771_v58  ;;  %v816_v40 = vadd.f32 %v812_v18, %v772_v47  ;;  %v899_v57 = vmul.f32 %v1784_v63, %v887_v12  ;;  %v989_v47 = vld [vmem:[%s2138_s7] sm:$0xff]  ;;  %1348 = vmatmul.mubr.msk.f32.gmra.mxu0 %vm418_vm1, %v415_v50 }
 0x1a6   : > { %v961_v37 = vadd.f32 3.0, %v957_v6  ;;  %v962_v60 = vadd.f32 3.0, %v958_v2  ;;  %v855_v8 = vmul.f32 %v1780_v61, %v843_v11  ;;  %v856_v41 = vmul.f32 %v1780_v61, %v844_v38  ;;  %v912_v39 = vpop.permute.xlu1 %911 }
 0x1a7   : > { %v915_v52 = vsel %vm913_vm9, %v1893_v53, %v912_v39  ;;  %v917_v9 = vsel %vm913_vm9, %v912_v39, %v1893_v53 }
 0x1a8   : > { %v965_v14 = vmax.f32 %v961_v37, 0.0  ;;  %v966_v49 = vmax.f32 %v962_v60, 0.0  ;;  %v859_v1 = vadd.f32 %v855_v8, %v815_v56  ;;  %v860_v19 = vadd.f32 %v856_v41, %v816_v40  ;;  %v552_v56 = vld [vmem:[%s2134_s3] sm:$0xff] }
 0x1a9   : > { %v931_v46 = vmul.f32 %v1993_v34, %v915_v52  ;;  %v932_v61 = vmul.f32 %v1996_v35, %v917_v9 }
 0x1aa   : > { %v969_v17 = vmin.f32 %v965_v14, 6.0  ;;  %v970_v24 = vmin.f32 %v966_v49, 6.0  ;;  %v903_v55 = vadd.f32 %v899_v57, %v859_v1  ;;  %v904_v27 = vadd.f32 %v900_v42, %v860_v19  ;;  %v1170_v1 = vld [vmem:[%s2142_s11] sm:$0xff] }
 0x1ab   : > { %v943_v15 = vmul.f32 %v1790_v5, %v931_v46  ;;  %v944_v53 = vmul.f32 %v1790_v5, %v932_v61 }
 0x1ac   : > { %v973_v3 = vmul.f32 %v969_v17, %v957_v6  ;;  %v974_v29 = vmul.f32 %v970_v24, %v958_v2  ;;  %v1067_v6 = vld [vmem:[%s2140_s9 + $0x8] sm:$0xff] }
 0x1ad   : > { %v947_v35 = vadd.f32 %v943_v15, %v903_v55  ;;  %v948_v51 = vadd.f32 %v944_v53, %v904_v27 }
 0x1ae   : > { %v2060_v30 = vmul.f32 0.16666667, %v973_v3  ;;  %v2062_v45 = vmul.f32 0.16666667, %v974_v29 }
 0x1b0   : > { %v981_v34 = vadd.f32 %v2062_v45, %v2060_v30 }
 0x1b2   : > { %982 = vadd.xlane.f32.xlu0 %v981_v34 }
 0x1b3   : > { %v955_v4 = vpop.permute.xlu1 %954 }
 0x1b4   : > { %v959_v63 = vadd.f32 %v955_v4, %v947_v35  ;;  %v960_v62 = vadd.f32 %v955_v4, %v948_v51 }
 0x1b6   : > { %v963_v33 = vadd.f32 3.0, %v959_v63  ;;  %v964_v36 = vadd.f32 3.0, %v960_v62 }
 0x1b8   : > { %v967_v16 = vmax.f32 %v963_v33, 0.0  ;;  %v968_v21 = vmax.f32 %v964_v36, 0.0 }
 0x1ba   : > { %v971_v43 = vmin.f32 %v967_v16, 6.0  ;;  %v972_v20 = vmin.f32 %v968_v21, 6.0 }
 0x1bc   : > { %v975_v5 = vmul.f32 %v971_v43, %v959_v63  ;;  %v976_v23 = vmul.f32 %v972_v20, %v960_v62 }
 0x1be   : > { %v979_v10 = vmul.f32 0.16666667, %v975_v5  ;;  %v980_v22 = vmul.f32 0.16666667, %v976_v23 }
 0x1c0   : > { %v984_v26 = vadd.f32 %v980_v22, %v979_v10 }
 0x1c2   : > { %985 = vadd.xlane.f32.xlu1 %v984_v26 }
 0x23b   : > { %v983_v13 = vpop.xlane.xlu0 %982 }
 0x23c   : > { %v987_v58 = vmul.f32 0.00390625, %v983_v13 }
 0x24b   : > { %v986_v31 = vpop.xlane.xlu1 %985 }
 0x24c   : > { %v988_v32 = vmul.f32 0.00390625, %v986_v31 }
 0x24e   : > { %1374 = vmatpush3.msra.mxu1 %v988_v32 }
 0x24f   : > { %1375 = vmatprep.subr.mxu1 %v1524_v0 }
 0x250   : > { %1376 = vmatpush3.msra.mxu1 %v987_v58 }
 0x251   : > { %1378 = vmatmul.mubr.msk.f32.vlgmr.msra.gmra.mxu1 %vm991_vm11, %v989_v47 }
 0x252   : > { %1382 = vmatprep.mubr.msk.f32.mxu1 %vm1068_vm12, %v1066_v48 }
 0x265   : > { %v511_v19 = vpop.f32.mrf.mxu0 }
 0x267   : > { %v513_v24 = vpop.f32.mrf.mxu0 }
 0x311   : > { %v1061_v28 = vpop.f32.mrf.mxu1 }
 0x312   : > { %v1062_v18 = vadd.f32 %v1061_v28, %v990_v59 }
 0x313   : > { %v1379_v54 = vpop.f32.mrf.mxu1 }
 0x314   : > { %v1065_v44 = vmax.f32 %v1062_v18, 0.0 }
 0x316   : > { %1380 = vmatprep.subr.mxu1 %v1065_v44 }
 0x317   : > { %1381 = vmatpush3.msra.mxu1 %v1065_v44 }
 0x318   : > { %1383 = vmatmul.mubr.msk.f32.vlgmr.msra.gmra.mxu1 %vm1068_vm12, %v1067_v6 }
 0x319   : > { %1242 = vmatprep.mubr.f32.mxu1 %v1524_v0 }
 0x3d8   : > { %v1384_v2 = vpop.f32.mrf.mxu1 }
 0x3d9   : > { %v1147_v11 = vadd.f32 3.0, %v1384_v2 }
 0x3da   : > { %v1141_v38 = vpop.f32.mrf.mxu1 }
 0x3db   : > { %v1151_v12 = vmax.f32 %v1147_v11, 0.0  ;;  %v1142_v25 = vadd.f32 3.0, %v1141_v38 }
 0x3dd   : > { %v1153_v37 = vmin.f32 %v1151_v12, 6.0  ;;  %v1150_v60 = vmax.f32 %v1142_v25, 0.0 }
 0x3df   : > { %v1155_v8 = vmul.f32 0.16666667, %v1153_v37  ;;  %v1152_v41 = vmin.f32 %v1150_v60, 6.0 }
 0x3e1   : > { %v1154_v39 = vmul.f32 0.16666667, %v1152_v41  ;;  %1163 = vperm.xlu1 %1457, %v1155_v8  }
 0x3e3   : > { %1158 = vperm.xlu0 %1458, %v1154_v39  }
 0x3e5   : > { %555 = vperm.xlu1 %1457, %v552_v56  }
 0x3e7   : > { %1460 = vset.pattern.permute.xlu0 %v1526_v7 }
 0x3e9   : > { %1459 = vset.pattern.permute.xlu1 %v1526_v7 }
 0x3ea   : > { %1172 = vperm.xlu1 %1459, %v552_v56  }
 0x45c   : > { %v1164_v0 = vpop.permute.xlu1 %1163 }
 0x45d   : > { %v1168_v40 = vmul.f32 %v1164_v0, %v979_v10  ;;  %v1169_v52 = vmul.f32 %v1164_v0, %v980_v22 }
 0x45e   : > { %v1159_v9 = vpop.permute.xlu0 %1158 }
 0x45f   : > { %v1166_v14 = vmul.f32 %v1159_v9, %v2060_v30  ;;  %v1167_v49 = vmul.f32 %v1159_v9, %v2062_v45  ;;  %1206 = vmatprep.subr.mxu1 %v1169_v52 }
 0x460   : > { %1207 = vmatpush1.msra.mxu1 %v1168_v40  ;;  %v556_v7 = vpop.permute.xlu1 %555 }
 0x461   : > { %1208 = vmatprep.subr.mxu1 %v1167_v49  ;;  %v558_v61 = vadd.f32 %v556_v7, %v511_v19  ;;  %v559_v3 = vadd.f32 %v556_v7, %v513_v24 }
 0x462   : > { %1209 = vmatpush1.msra.mxu1 %v1166_v14 }
 0x463   : > { %1359 = vmatmul.mubr.msk.f32.vlgmr.msra.gmra.mxu1 %vm991_vm11, %v1170_v1 }
 0x465   : > { %v1173_v17 = vpop.permute.xlu1 %1172 }
 0x523   : > { %v1244_v46 = vpop.f32.mrf.mxu1 }
 0x524   : > { %v1245_v57 = vadd.f32 %v1244_v46, %v1173_v17 }
 0x525   : > { %v1246_v42 = vpop.f32.mrf.mxu1 }
 0x526   : > { %v1249_v29 = vadd.f32 %v1245_v57, %v558_v61  ;;  %v1247_v55 = vadd.f32 %v1246_v42, %v1173_v17 }
 0x528   : > { %v1251_v27 = vadd.f32 3.0, %v1249_v29  ;;  %v1250_v15 = vadd.f32 %v1247_v55, %v559_v3 }
 0x52a   : > { %v1253_v53 = vmax.f32 %v1251_v27, 0.0  ;;  %v1252_v30 = vadd.f32 3.0, %v1250_v15 }
 0x52c   : > { %v1255_v45 = vmin.f32 %v1253_v53, 6.0  ;;  %v1254_v34 = vmax.f32 %v1252_v30, 0.0 }
 0x52e   : > { %v1257_v35 = vmul.f32 %v1255_v45, %v1249_v29  ;;  %v1256_v51 = vmin.f32 %v1254_v34, 6.0 }
 0x530   : > { %v1259_v4 = vmul.f32 0.16666667, %v1257_v35  ;;  %v1258_v63 = vmul.f32 %v1256_v51, %v1250_v15 }
 0x532   : > { %v1260_v62 = vmul.f32 0.16666667, %v1258_v63  ;;  %1261 = vst [vmem:[%s406_s16] sm:$0xff] %v1259_v4 }
 0x534   : > { %1262 = vst [vmem:[%s406_s16 + $0x8] sm:$0xff] %v1260_v62 }
 0x535   : > { %1475 = shalt.err (!%p1472_p3)
}
 0x536   : > { %s1476_s0 = scalar_lea.hbm %s1276_s20, 256  ;;  %s1480_s16 = scalar_lea.hbm %s2143_s12, 512 }
 0x537   : > { %p1477_p4 = scmp.ne.s32.totalorder %s1276_s20, %s1476_s0  ;;  %p1481_p9 = scmp.lt.s32.totalorder %s1276_s20, %s2143_s12 }
 0x538   : > { %p1482_p10 = scmp.lt.s32.totalorder %s1480_s16, %s1476_s0 }
 0x539   : > { %p1478_p7 = pnand %p1477_p4, %p1647_p5 }
 0x53a   : > { %p1483_p11 = por %p1482_p10, %p1481_p9 }
 0x53b   : > { %p1479_p8 = pneg %p1478_p7 }
 0x53d   : > { %p1484_p12 = pnand %p1483_p11, %p1479_p8 }
 0x53f   : > { %1487 = shalt.err (!%p1484_p12)
}
 0x540   : > { %1385 = dma.vmem_to_hbm [thread:$0]  (%p1647_p5), %s1279_s17, 256, %s1276_s20, %s1264_s24  }
 0x541 PF: > { %p1391_p13 = scmp.ge.s32.totalorder %s1522_s23, 2  ;;  %s1290_s26 = sand.u32 1, %s1510_s6  }
 0x542   : > { %s1291_s27 = scalar_lea.sflag [#allocation3], %s1290_s26 }
 0x543   : > { %p1388_p0 = pnand %p1391_p13, %p1651_p6 }
 0x545   : > { %p1389_p1 = pneg %p1388_p0 }
 0x547   : > { %1505 = dma.done.wait (%p1389_p1), %s1291_s27, 256  }
 0x548   : > { %1507 = vsyncadd (%p1389_p1), %s1291_s27, 4294967040  ;;  %p22_p2 = scmp.ge.s32.totalorder %s1634_s25, 4   ;;  %s2148_s6 = smov %s1514_s21 }
 0x549   : > { %s2149_s21 = smov %s1518_s22  ;;  %s2150_s22 = smov %s1645_s28 }
 0x54a   : > { %s2151_s23 = smov %s1634_s25  ;;  %24 = sbr.rel (!%p22_p2) target bundleno = 5 (0x5), region = 110 }
 0x54f   :  { %1296 = vsyncpa [#allocation3], 1 }
 0x550   :  { %1298 = vsyncpa [#allocation3 + $0x1], 1 }

</bundles_post_ra>
